<compile_context>
chip_gen: v7x
topology: tpu7x:2x2x1
jax: 0.10.0
libtpu: 0.0.40
codegen_flags: <defaults>
</compile_context>

<pallas_src>
import jax
import jax.numpy as jnp
from jax.experimental import pallas as pl
from jax.experimental.pallas import tpu as pltpu


def _round_up(n: int, m: int) -> int:
    return ((n + m - 1) // m) * m


def linear_row_kernel(x_ref, w_ref, b_ref, o_ref):
    # x_ref: (b_tile, IN) VMEM     -- batch tile of activations
    # w_ref: (1, IN)     VMEM      -- PyTorch-layout weight row, grid-resident
    # b_ref: (1,)        SMEM      -- scalar bias
    # o_ref: (b_tile, 1) VMEM      -- output tile
    prod = x_ref[...] * w_ref[...]                  # VPU broadcast multiply
    acc = jnp.sum(prod, axis=-1, keepdims=True)     # XLU lane reduce (no MXU)
    o_ref[...] = (acc + b_ref[0]).astype(o_ref.dtype)


def simple_model_forward(x, weight, bias, *, block_b=1024):
    """y = x @ weight.T + bias  (PyTorch nn.Linear(IN, 1) semantics).

    x:      (B, IN)  float32
    weight: (1, IN)  float32  -- PyTorch layout (out_features, in_features)
    bias:   (1,)     float32
    returns (B, 1)   float32
    """
    B, IN = x.shape
    OUT = weight.shape[0]
    assert OUT == 1, "kernel is specialized to nn.Linear(IN, 1)"
    assert weight.shape == (OUT, IN) and bias.shape == (OUT,)

    # Batch tile: multiple of 8 (vreg sublanes), capped at block_b.
    b_tile = int(min(block_b, _round_up(B, 8)))
    b_pad = _round_up(B, b_tile)
    if b_pad != B:
        x = jnp.pad(x, ((0, b_pad - B), (0, 0)))

    y_pad = pl.pallas_call(
        linear_row_kernel,
        out_shape=jax.ShapeDtypeStruct((b_pad, OUT), x.dtype),
        grid=(b_pad // b_tile,),
        in_specs=[
            # Streamed batch tile of x.
            pl.BlockSpec((b_tile, IN), lambda i: (i, 0)),
            # Weight row: constant block index -> VMEM-resident across grid.
            pl.BlockSpec((OUT, IN), lambda i: (0, 0)),
            # Bias: scalar in SMEM, no VMEM tile / DMA of its own.
            pl.BlockSpec(memory_space=pltpu.MemorySpace.SMEM),
        ],
        out_specs=pl.BlockSpec((b_tile, OUT), lambda i: (i, 0)),
        compiler_params=pltpu.CompilerParams(
            dimension_semantics=("parallel",)),
    )(x, weight, bias)

    return y_pad[:B] if b_pad != B else y_pad


if __name__ == "__main__":
    key = jax.random.PRNGKey(0)
    kx, kw, kb = jax.random.split(key, 3)

    # Shapes implied by the module: x = (1, 10), Linear(10, 1)
    B, IN, OUT = 1, 10, 1
    x = jax.random.normal(kx, (B, IN), dtype=jnp.float32)

    # Deterministic parameter init (mimic PyTorch's uniform(-1/sqrt(IN), 1/sqrt(IN)))
    bound = 1.0 / (IN ** 0.5)
    weight = jax.random.uniform(kw, (OUT, IN), jnp.float32, -bound, bound)
    bias = jax.random.uniform(kb, (OUT,), jnp.float32, -bound, bound)

    y = simple_model_forward(x, weight, bias)
    jax.block_until_ready(y)

    y_ref = x @ weight.T + bias
    assert y.shape == (B, OUT)
    assert jnp.allclose(y, y_ref, atol=1e-5, rtol=1e-5)

    # Also exercise the batch-tiled (grid > 1) path with a non-multiple-of-8 batch.
    B2 = 20
    x2 = jax.random.normal(kx, (B2, IN), dtype=jnp.float32)
    y2 = simple_model_forward(x2, weight, bias, block_b=8)
    jax.block_until_ready(y2)
    y2_ref = x2 @ weight.T + bias
    assert y2.shape == (B2, OUT)
    assert jnp.allclose(y2, y2_ref, atol=1e-5, rtol=1e-5)

    print("KERNEL_OK")
</pallas_src>

<mosaic_0001>
module attributes {stable_mosaic.version = 11 : i64} {
  func.func @linear_row_kernel(%arg0: i32, %arg1: memref<8x10xf32, #tpu.memory_space<vmem>>, %arg2: memref<1x10xf32, #tpu.memory_space<vmem>>, %arg3: memref<1xf32, #tpu.memory_space<smem>>, %arg4: memref<8x1xf32, #tpu.memory_space<vmem>>) attributes {dimension_semantics = [#tpu.dimension_semantics<parallel>], iteration_bounds = array<i64: 1>, scalar_prefetch = 0 : i64, scratch_operands = 0 : i64, tpu.core_type = #tpu.core_type<tc>, window_params = [{transform_indices = @transform_0, window_bounds = array<i64: 8, 10>}, {pipeline_mode = #tpu.pipeline_mode<synchronous>, transform_indices = @transform_1, window_bounds = array<i64: 1, 10>}, {transform_indices = @transform_2, window_bounds = array<i64: 1>}, {transform_indices = @transform_3, window_bounds = array<i64: 8, 1>}]} {
    %c0 = arith.constant 0 : index
    %c0_0 = arith.constant 0 : index
    %0 = vector.load %arg1[%c0, %c0_0] : memref<8x10xf32, #tpu.memory_space<vmem>>, vector<8x10xf32>
    %c0_1 = arith.constant 0 : index
    %c0_2 = arith.constant 0 : index
    %1 = vector.load %arg2[%c0_1, %c0_2] : memref<1x10xf32, #tpu.memory_space<vmem>>, vector<1x10xf32>
    %2 = vector.broadcast %1 : vector<1x10xf32> to vector<8x10xf32>
    %3 = arith.mulf %0, %2 : vector<8x10xf32>
    %cst = arith.constant dense<0.000000e+00> : vector<8xf32>
    %4 = vector.multi_reduction <add>, %3, %cst [1] : vector<8x10xf32> to vector<8xf32>
    %5 = vector.shape_cast %4 : vector<8xf32> to vector<8x1xf32>
    %c0_3 = arith.constant 0 : index
    %6 = memref.load %arg3[%c0_3] : memref<1xf32, #tpu.memory_space<smem>>
    %7 = vector.broadcast %6 : f32 to vector<8x1xf32>
    %8 = arith.addf %5, %7 : vector<8x1xf32>
    %c0_4 = arith.constant 0 : index
    %c0_5 = arith.constant 0 : index
    %9 = vector.load %arg4[%c0_4, %c0_5] : memref<8x1xf32, #tpu.memory_space<vmem>>, vector<8x1xf32>
    tpu.vector_store %arg4[%c0_4, %c0_5], %8 {strides = array<i32>} : memref<8x1xf32, #tpu.memory_space<vmem>>, vector<8x1xf32>,
    return
  }
  func.func @transform_0(%arg0: i32) -> (i32, i32) {
    %c0_i32 = arith.constant 0 : i32
    %c0_i32_0 = arith.constant 0 : i32
    return %arg0, %c0_i32 : i32, i32
  }
  func.func @transform_1(%arg0: i32) -> (i32, i32) {
    %c0_i32 = arith.constant 0 : i32
    %c0_i32_0 = arith.constant 0 : i32
    %c0_i32_1 = arith.constant 0 : i32
    return %c0_i32, %c0_i32_0 : i32, i32
  }
  func.func @transform_2(%arg0: i32) -> i32 {
    %c0_i32 = arith.constant 0 : i32
    %c0_i32_0 = arith.constant 0 : i32
    return %c0_i32 : i32
  }
  func.func @transform_3(%arg0: i32) -> (i32, i32) {
    %c0_i32 = arith.constant 0 : i32
    %c0_i32_0 = arith.constant 0 : i32
    return %arg0, %c0_i32 : i32, i32
  }
}

</mosaic_0001>

<bundles_post_ra>
// kernel: tpu_custom_call.1
= control target key start
LH: loop header
LB: loop body
LE: loop exit
PB: predicated region body
PF: predicated region fallthrough
CT: control target
= control target key end

     0   :  { %9 = vsyncpa [#allocation4], 0  ;;  %s76_s12 = smov [#allocation3]   ;;  %s118_s0 = inlined_call_operand.hbm [shape: f32[8,10], index: 0, kind: input, shape index: {}]   ;;  %s119_s1 = inlined_call_operand.vmem [shape: f32[1,10], index: 1, kind: input, shape index: {}]   ;;  %s120_s2 = inlined_call_operand.<no memory space> [shape: f32[1], index: 2, kind: input, shape index: {}]   ;;  %s121_s3 = inlined_call_operand.vmem [shape: f32[8,1], index: 3, kind: output, shape index: {}]  }
   0x1   :  { %s16_s13 = sshll.u32 %s76_s12, 4  ;;  %s52_s16 = scalar_lea.hbm %s118_s0, 128  ;;  %s17_s13 = int_to_ptr.vmem [resolvable:$true] %s16_s13 }
   0x2   :  { %p53_p0 = scmp.ne.s32.totalorder %s118_s0, %s52_s16  ;;  %p56_p1 = scmp.lt.u32.totalorder %s52_s16, %s118_s0 }
   0x4   :  { %p58_p2 = pnand %p56_p1, %p53_p0 }
   0x6   :  { %61 = shalt.err (!%p58_p2)
}
   0x7   :  { %s62_s21 = scalar_lea.vmem %s17_s13, 128  ;;  %p67_p4 = scmp.lt.s32.totalorder %s17_s13, %s17_s13 }
   0x8   :  { %p63_p3 = scmp.ne.s32.totalorder %s17_s13, %s62_s21  ;;  %p68_p5 = scmp.lt.s32.totalorder %s62_s21, %s62_s21 }
   0xa   :  { %p69_p6 = por %p68_p5, %p67_p4 }
   0xc   :  { %p70_p7 = pnand %p69_p6, %p63_p3 }
   0xe   :  { %73 = shalt.err (!%p70_p7)
}
   0xf   :  { %19 = dma.hbm_to_vmem [thread:$0]  %s118_s0, 128, %s17_s13, [#allocation4]  }
  0x10   :  { %74 = dma.done.wait [#allocation4], 128  }
  0x11   :  { %75 = vsyncadd [#allocation4], 4294967168  ;;  %v27_v0 = vld [vmem:[#allocation3] sm:$0xff]  ;;  %vm36_vm0 = vcmask 80896   ;;  %v41_v4 = vstv %s120_s2  ;;  %vm43_vm1 = vcmask 7168  }
  0x12   :  { %v50_v1 = vld [vmem:[%s119_s1] ss:$0 sm:$0xff] }
  0x13   :  { %v35_v2 = vmul.f32 %v50_v1, %v27_v0 }
  0x15   :  { %v37_v3 = vsel %vm36_vm0, %v35_v2, 0.0 }
  0x16   :  { %38 = vadd.xlane.f32.xlu0 %v37_v3 }
  0xa3   :  { %v39_v5 = vpop.xlane.xlu0 %38 }
  0xa4   :  { %v42_v6 = vadd.f32 %v41_v4, %v39_v5 }
  0xa6   :  { %44 = vst.msk [vmem:[%s121_s3] sm:$0xff] %vm43_vm1, %v42_v6 }
  0xa7   :  { %49 = vsyncpa [#allocation4], 1 }

</bundles_post_ra>
